<compile_context>
chip_gen: v7x
topology: tpu7x:2x2x1
jax: 0.10.0
libtpu: 0.0.40
codegen_flags: <defaults>
</compile_context>

<pallas_src>
import functools

import jax
import jax.numpy as jnp
from jax.experimental import pallas as pl
from jax.experimental.pallas import tpu as pltpu


def _round_up(a, m):
    return ((a + m - 1) // m) * m


def _conv_shift_kernel(x_ref, w_ref, b_ref, o_ref, *, ka, Ws):
    """Dense (phase-grid) conv for one image via ka*ka shifted MXU matmuls.

    x_ref: (1, Cg, Ls)        bf16  phase-major channels, flattened phase plane
    w_ref: (ka*ka, tco, Cg)   bf16  per-shift channel-mixing matrices
    b_ref: (tco, 1)           f32   bias column
    o_ref: (1, tco, Ls)             dense conv result over the phase grid
    """
    Ls = x_ref.shape[2]
    tco = w_ref.shape[1]

    # Rolls happen in f32 (lane rolls of packed bf16 are avoided for lowering
    # safety); the MXU still consumes bf16 operands with f32 accumulation.
    x = x_ref[0].astype(jnp.float32)          # (Cg, Ls)
    w = w_ref[...]                            # (ka*ka, tco, Cg) bf16

    acc = jnp.zeros((tco, Ls), jnp.float32)
    for a in range(ka):
        row_off = a * Ws
        # Hoist + reuse the row roll; column rolls derive from it.
        x_row = x if row_off == 0 else pltpu.roll(x, shift=Ls - row_off, axis=1)
        for b in range(ka):
            x_tap = x_row if b == 0 else pltpu.roll(x_row, shift=Ls - b, axis=1)
            # Channel mixing on the MXU: (tco, Cg) @ (Cg, Ls), bf16 in / f32 out.
            acc = acc + jnp.dot(w[a * ka + b],
                                x_tap.astype(jnp.bfloat16),
                                preferred_element_type=jnp.float32)
    acc = acc + b_ref[...]                    # bias add in f32
    o_ref[0] = acc.astype(o_ref.dtype)


def conv_layer_forward(x, weight, bias, *, stride):
    """ConvLayer forward: ReflectionPad2d(k//2) then Conv2d(Cin, Cout, k, stride).

    x: (B, Cin, H, W) f32 NCHW; weight: (Cout, Cin, k, k); bias: (Cout,).
    """
    B, Cin, H, W = x.shape
    Cout, Cin_w, k, k2 = weight.shape
    assert Cin_w == Cin and k == k2
    s = int(stride)
    pad = k // 2
    Hp, Wp = H + 2 * pad, W + 2 * pad
    assert Hp >= k and Wp >= k
    Hout = (Hp - k) // s + 1
    Wout = (Wp - k) // s + 1

    # Pixel-unshuffle geometry: stride-s conv over (Hp, Wp) == stride-1 conv
    # over s*s phase planes of shape (Hs, Ws); only ka*ka distinct lane shifts
    # remain, so strided layers do no redundant tap work.
    Hs, Ws = -(-Hp // s), -(-Wp // s)
    ka = (k - 1) // s + 1
    Cg = Cin * s * s                        # phase-stacked input channels
    n_shift = ka * ka
    Np = Hs * Ws                            # valid lanes per image
    Ls = _round_up(Np, 128)                 # 128-aligned per-image lane slot

    # Roll-trick invariant: every tap read for a KEPT output position lands
    # inside the valid phase-grid data (no wraparound, no neighbour reads).
    assert Hout - 1 + (ka - 1) <= Hs - 1 and Wout - 1 + (ka - 1) <= Ws - 1
    assert (Hout - 1 + ka - 1) * Ws + (Wout - 1 + ka - 1) < Ls

    # ---- wrapper-side layout plumbing (one cheap pass each, no FLOPs) ----
    x_pad = jnp.pad(x, ((0, 0), (0, 0), (pad, pad), (pad, pad)), mode="reflect")
    if s == 1:
        x_ph = x_pad.reshape(B, Cg, Np)
    else:
        x_pad = jnp.pad(x_pad, ((0, 0), (0, 0), (0, Hs * s - Hp), (0, Ws * s - Wp)))
        x_ph = (x_pad.reshape(B, Cin, Hs, s, Ws, s)
                .transpose(0, 3, 5, 1, 2, 4)          # (B, p, q, Cin, Hs, Ws)
                .reshape(B, Cg, Np))
    # bf16 in HBM halves the input DMA traffic; accumulation stays f32 in-kernel.
    x_ph = jnp.pad(x_ph, ((0, 0), (0, 0), (0, Ls - Np))).astype(jnp.bfloat16)

    # Pack weights per distinct (row, col) shift: (n_shift, Cout, Cg); zeros for
    # phase/shift combinations that fall outside the k x k window.
    w_shift = []
    for a in range(ka):
        for b in range(ka):
            cols = []
            for p in range(s):
                for q in range(s):
                    di, dj = a * s + p, b * s + q
                    if di < k and dj < k:
                        cols.append(weight[:, :, di, dj])       # (Cout, Cin)
                    else:
                        cols.append(jnp.zeros((Cout, Cin), weight.dtype))
            w_shift.append(jnp.concatenate(cols, axis=1))       # (Cout, Cg)
    w_packed = jnp.stack(w_shift, axis=0).astype(jnp.bfloat16)  # (n_shift, Cout, Cg)
    bias_col = bias.reshape(Cout, 1).astype(jnp.float32)

    # Optional Cout tiling (second parallel grid axis): keeps the per-step
    # output block inside v7x's 64 MiB VMEM at production sizes and adds
    # pipeline steps when the batch is small.
    tco = Cout
    if Cout > 64:
        for cand in (64, 32):
            if Cout % cand == 0:
                tco = cand
                break
    n_co = Cout // tco

    kernel = functools.partial(_conv_shift_kernel, ka=ka, Ws=Ws)

    flops = 2 * B * n_shift * Cout * Cg * Ls
    bytes_accessed = (x_ph.size * 2 + w_packed.size * 2
                      + bias_col.size * 4 + B * Cout * Ls * 4)
    vmem_bytes = (
        2 * Cg * Ls * 2              # x block, double-buffered (bf16)
        + 2 * tco * Ls * 4           # out block, double-buffered (f32)
        + 2 * (n_shift * tco * Cg * 2 + tco * 4)   # weights + bias blocks
        + 3 * Cg * Ls * 4            # live rolled-tap temporaries (f32)
        + tco * Ls * 4               # accumulator
    )
    vmem_limit = int(min(96 * 2**20, max(8 * 2**20, 2 * vmem_bytes)))

    dense = pl.pallas_call(
        kernel,
        out_shape=jax.ShapeDtypeStruct((B, Cout, Ls), x.dtype),
        grid=(B, n_co),
        in_specs=[
            pl.BlockSpec((1, Cg, Ls), lambda i, j: (i, 0, 0)),          # one image
            pl.BlockSpec((n_shift, tco, Cg), lambda i, j: (0, j, 0)),   # shift weights
            pl.BlockSpec((tco, 1), lambda i, j: (j, 0)),                # bias
        ],
        out_specs=pl.BlockSpec((1, tco, Ls), lambda i, j: (i, j, 0)),
        compiler_params=pltpu.CompilerParams(
            dimension_semantics=("parallel", "parallel"),
            vmem_limit_bytes=vmem_limit),
        cost_estimate=pl.CostEstimate(flops=int(flops), transcendentals=0,
                                      bytes_accessed=int(bytes_accessed)),
    )(x_ph, w_packed, bias_col)

    # Crop the dense phase-grid result to the conv output (cheap slice).
    out = dense[:, :, :Np].reshape(B, Cout, Hs, Ws)[:, :, :Hout, :Wout]
    return out


def conv_layer_reference(x, weight, bias, stride):
    """Pure-JAX reference matching the PyTorch forward (for verification)."""
    k = weight.shape[2]
    pad = k // 2
    x_pad = jnp.pad(x, ((0, 0), (0, 0), (pad, pad), (pad, pad)), mode="reflect")
    y = jax.lax.conv_general_dilated(
        x_pad, weight, window_strides=(stride, stride), padding="VALID",
        dimension_numbers=("NCHW", "OIHW", "NCHW"),
        precision=jax.lax.Precision.HIGHEST)
    return y + bias[None, :, None, None]


if __name__ == "__main__":
    key = jax.random.PRNGKey(0)
    kx, kp = jax.random.split(key)

    B, Cin, H, W = 4, 3, 16, 16          # B>=4 so the pipeline has steps to overlap
    x = jax.random.normal(kx, (B, Cin, H, W), jnp.float32)

    # (out_channels, kernel_size, stride) — exercises pad, stride-1 and the
    # pixel-unshuffle stride-2 path (incl. zero-padded shift/phase combos).
    for Cout, ksize, stride in [(8, 3, 1), (8, 3, 2), (16, 5, 2)]:
        kw, kb = jax.random.split(jax.random.fold_in(kp, 64 * ksize + 8 * stride + Cout))
        fan_in = Cin * ksize * ksize
        weight = jax.random.normal(kw, (Cout, Cin, ksize, ksize), jnp.float32) / (fan_in ** 0.5)
        bias = 0.1 * jax.random.normal(kb, (Cout,), jnp.float32)

        out = conv_layer_forward(x, weight, bias, stride=stride)
        out = jax.block_until_ready(out)

        # The kernel feeds the MXU bf16 operands (f32 accumulate): validate
        # tightly against a reference on the same bf16-rounded operands, and
        # loosely (gross-error guard) against the exact f32 reference.
        x_bf = x.astype(jnp.bfloat16).astype(jnp.float32)
        w_bf = weight.astype(jnp.bfloat16).astype(jnp.float32)
        ref_bf = conv_layer_reference(x_bf, w_bf, bias, stride)
        ref_f32 = conv_layer_reference(x, weight, bias, stride)

        assert out.shape == ref_f32.shape, (out.shape, ref_f32.shape)
        err_bf = float(jnp.max(jnp.abs(out - ref_bf)))
        assert jnp.allclose(out, ref_bf, atol=3e-4, rtol=3e-4), ("bf16-operand diff", err_bf)
        err_f32 = float(jnp.max(jnp.abs(out - ref_f32)))
        assert err_f32 < 0.1, ("f32 sanity diff", err_f32)

    print("KERNEL_OK")
</pallas_src>

<mosaic_0001>
module attributes {stable_mosaic.version = 11 : i64} {
  func.func @_conv_shift_kernel(%arg0: i32, %arg1: i32, %arg2: memref<1x3x384xbf16, #tpu.memory_space<vmem>>, %arg3: memref<9x8x3xbf16, #tpu.memory_space<vmem>>, %arg4: memref<8x1xf32, #tpu.memory_space<vmem>>, %arg5: memref<1x8x384xf32, #tpu.memory_space<vmem>>) attributes {dimension_semantics = [#tpu.dimension_semantics<parallel>, #tpu.dimension_semantics<parallel>], iteration_bounds = array<i64: 4, 1>, scalar_prefetch = 0 : i64, scratch_operands = 0 : i64, tpu.core_type = #tpu.core_type<tc>, window_params = [{transform_indices = @transform_0, window_bounds = array<i64: 1, 3, 384>}, {transform_indices = @transform_1, window_bounds = array<i64: 9, 8, 3>}, {transform_indices = @transform_2, window_bounds = array<i64: 8, 1>}, {transform_indices = @transform_3, window_bounds = array<i64: 1, 8, 384>}]} {
    %c0 = arith.constant 0 : index
    %c0_0 = arith.constant 0 : index
    %c0_1 = arith.constant 0 : index
    %0 = vector.load %arg2[%c0, %c0_0, %c0_1] : memref<1x3x384xbf16, #tpu.memory_space<vmem>>, vector<1x3x384xbf16>
    %1 = vector.shape_cast %0 : vector<1x3x384xbf16> to vector<3x384xbf16>
    %2 = arith.extf %1 : vector<3x384xbf16> to vector<3x384xf32>
    %c0_2 = arith.constant 0 : index
    %c0_3 = arith.constant 0 : index
    %c0_4 = arith.constant 0 : index
    %3 = vector.load %arg3[%c0_2, %c0_3, %c0_4] : memref<9x8x3xbf16, #tpu.memory_space<vmem>>, vector<9x8x3xbf16>
    %cst = arith.constant 0.000000e+00 : f32
    %4 = vector.broadcast %cst : f32 to vector<8x384xf32>
    %5 = vector.extract_strided_slice %3 {offsets = [0, 0, 0], sizes = [1, 8, 3], strides = [1, 1, 1]} : vector<9x8x3xbf16> to vector<1x8x3xbf16>
    %6 = vector.shape_cast %5 : vector<1x8x3xbf16> to vector<8x3xbf16>
    %7 = arith.truncf %2 : vector<3x384xf32> to vector<3x384xbf16>
    %cst_5 = arith.constant dense<0.000000e+00> : vector<8x384xf32>
    %8 = tpu.matmul %6, %7, %cst_5 {dimension_numbers = #tpu.dot_dimension_numbers<[1], [0], [0], [1], [0, 0, 1, 1], [], []>} : vector<8x3xbf16>, vector<3x384xbf16>, vector<8x384xf32> -> vector<8x384xf32>
    %9 = arith.addf %4, %8 : vector<8x384xf32>
    %c383_i32 = arith.constant 383 : i32
    %10 = tpu.dynamic_rotate %2 by %c383_i32 dim 1 : vector<3x384xf32>, i32 -> vector<3x384xf32>
    %11 = vector.extract_strided_slice %3 {offsets = [1, 0, 0], sizes = [1, 8, 3], strides = [1, 1, 1]} : vector<9x8x3xbf16> to vector<1x8x3xbf16>
    %12 = vector.shape_cast %11 : vector<1x8x3xbf16> to vector<8x3xbf16>
    %13 = arith.truncf %10 : vector<3x384xf32> to vector<3x384xbf16>
    %cst_6 = arith.constant dense<0.000000e+00> : vector<8x384xf32>
    %14 = tpu.matmul %12, %13, %cst_6 {dimension_numbers = #tpu.dot_dimension_numbers<[1], [0], [0], [1], [0, 0, 1, 1], [], []>} : vector<8x3xbf16>, vector<3x384xbf16>, vector<8x384xf32> -> vector<8x384xf32>
    %15 = arith.addf %9, %14 : vector<8x384xf32>
    %c382_i32 = arith.constant 382 : i32
    %16 = tpu.dynamic_rotate %2 by %c382_i32 dim 1 : vector<3x384xf32>, i32 -> vector<3x384xf32>
    %17 = vector.extract_strided_slice %3 {offsets = [2, 0, 0], sizes = [1, 8, 3], strides = [1, 1, 1]} : vector<9x8x3xbf16> to vector<1x8x3xbf16>
    %18 = vector.shape_cast %17 : vector<1x8x3xbf16> to vector<8x3xbf16>
    %19 = arith.truncf %16 : vector<3x384xf32> to vector<3x384xbf16>
    %cst_7 = arith.constant dense<0.000000e+00> : vector<8x384xf32>
    %20 = tpu.matmul %18, %19, %cst_7 {dimension_numbers = #tpu.dot_dimension_numbers<[1], [0], [0], [1], [0, 0, 1, 1], [], []>} : vector<8x3xbf16>, vector<3x384xbf16>, vector<8x384xf32> -> vector<8x384xf32>
    %21 = arith.addf %15, %20 : vector<8x384xf32>
    %c366_i32 = arith.constant 366 : i32
    %22 = tpu.dynamic_rotate %2 by %c366_i32 dim 1 : vector<3x384xf32>, i32 -> vector<3x384xf32>
    %23 = vector.extract_strided_slice %3 {offsets = [3, 0, 0], sizes = [1, 8, 3], strides = [1, 1, 1]} : vector<9x8x3xbf16> to vector<1x8x3xbf16>
    %24 = vector.shape_cast %23 : vector<1x8x3xbf16> to vector<8x3xbf16>
    %25 = arith.truncf %22 : vector<3x384xf32> to vector<3x384xbf16>
    %cst_8 = arith.constant dense<0.000000e+00> : vector<8x384xf32>
    %26 = tpu.matmul %24, %25, %cst_8 {dimension_numbers = #tpu.dot_dimension_numbers<[1], [0], [0], [1], [0, 0, 1, 1], [], []>} : vector<8x3xbf16>, vector<3x384xbf16>, vector<8x384xf32> -> vector<8x384xf32>
    %27 = arith.addf %21, %26 : vector<8x384xf32>
    %c383_i32_9 = arith.constant 383 : i32
    %28 = tpu.dynamic_rotate %22 by %c383_i32_9 dim 1 : vector<3x384xf32>, i32 -> vector<3x384xf32>
    %29 = vector.extract_strided_slice %3 {offsets = [4, 0, 0], sizes = [1, 8, 3], strides = [1, 1, 1]} : vector<9x8x3xbf16> to vector<1x8x3xbf16>
    %30 = vector.shape_cast %29 : vector<1x8x3xbf16> to vector<8x3xbf16>
    %31 = arith.truncf %28 : vector<3x384xf32> to vector<3x384xbf16>
    %cst_10 = arith.constant dense<0.000000e+00> : vector<8x384xf32>
    %32 = tpu.matmul %30, %31, %cst_10 {dimension_numbers = #tpu.dot_dimension_numbers<[1], [0], [0], [1], [0, 0, 1, 1], [], []>} : vector<8x3xbf16>, vector<3x384xbf16>, vector<8x384xf32> -> vector<8x384xf32>
    %33 = arith.addf %27, %32 : vector<8x384xf32>
    %c382_i32_11 = arith.constant 382 : i32
    %34 = tpu.dynamic_rotate %22 by %c382_i32_11 dim 1 : vector<3x384xf32>, i32 -> vector<3x384xf32>
    %35 = vector.extract_strided_slice %3 {offsets = [5, 0, 0], sizes = [1, 8, 3], strides = [1, 1, 1]} : vector<9x8x3xbf16> to vector<1x8x3xbf16>
    %36 = vector.shape_cast %35 : vector<1x8x3xbf16> to vector<8x3xbf16>
    %37 = arith.truncf %34 : vector<3x384xf32> to vector<3x384xbf16>
    %cst_12 = arith.constant dense<0.000000e+00> : vector<8x384xf32>
    %38 = tpu.matmul %36, %37, %cst_12 {dimension_numbers = #tpu.dot_dimension_numbers<[1], [0], [0], [1], [0, 0, 1, 1], [], []>} : vector<8x3xbf16>, vector<3x384xbf16>, vector<8x384xf32> -> vector<8x384xf32>
    %39 = arith.addf %33, %38 : vector<8x384xf32>
    %c348_i32 = arith.constant 348 : i32
    %40 = tpu.dynamic_rotate %2 by %c348_i32 dim 1 : vector<3x384xf32>, i32 -> vector<3x384xf32>
    %41 = vector.extract_strided_slice %3 {offsets = [6, 0, 0], sizes = [1, 8, 3], strides = [1, 1, 1]} : vector<9x8x3xbf16> to vector<1x8x3xbf16>
    %42 = vector.shape_cast %41 : vector<1x8x3xbf16> to vector<8x3xbf16>
    %43 = arith.truncf %40 : vector<3x384xf32> to vector<3x384xbf16>
    %cst_13 = arith.constant dense<0.000000e+00> : vector<8x384xf32>
    %44 = tpu.matmul %42, %43, %cst_13 {dimension_numbers = #tpu.dot_dimension_numbers<[1], [0], [0], [1], [0, 0, 1, 1], [], []>} : vector<8x3xbf16>, vector<3x384xbf16>, vector<8x384xf32> -> vector<8x384xf32>
    %45 = arith.addf %39, %44 : vector<8x384xf32>
    %c383_i32_14 = arith.constant 383 : i32
    %46 = tpu.dynamic_rotate %40 by %c383_i32_14 dim 1 : vector<3x384xf32>, i32 -> vector<3x384xf32>
    %47 = vector.extract_strided_slice %3 {offsets = [7, 0, 0], sizes = [1, 8, 3], strides = [1, 1, 1]} : vector<9x8x3xbf16> to vector<1x8x3xbf16>
    %48 = vector.shape_cast %47 : vector<1x8x3xbf16> to vector<8x3xbf16>
    %49 = arith.truncf %46 : vector<3x384xf32> to vector<3x384xbf16>
    %cst_15 = arith.constant dense<0.000000e+00> : vector<8x384xf32>
    %50 = tpu.matmul %48, %49, %cst_15 {dimension_numbers = #tpu.dot_dimension_numbers<[1], [0], [0], [1], [0, 0, 1, 1], [], []>} : vector<8x3xbf16>, vector<3x384xbf16>, vector<8x384xf32> -> vector<8x384xf32>
    %51 = arith.addf %45, %50 : vector<8x384xf32>
    %c382_i32_16 = arith.constant 382 : i32
    %52 = tpu.dynamic_rotate %40 by %c382_i32_16 dim 1 : vector<3x384xf32>, i32 -> vector<3x384xf32>
    %53 = vector.extract_strided_slice %3 {offsets = [8, 0, 0], sizes = [1, 8, 3], strides = [1, 1, 1]} : vector<9x8x3xbf16> to vector<1x8x3xbf16>
    %54 = vector.shape_cast %53 : vector<1x8x3xbf16> to vector<8x3xbf16>
    %55 = arith.truncf %52 : vector<3x384xf32> to vector<3x384xbf16>
    %cst_17 = arith.constant dense<0.000000e+00> : vector<8x384xf32>
    %56 = tpu.matmul %54, %55, %cst_17 {dimension_numbers = #tpu.dot_dimension_numbers<[1], [0], [0], [1], [0, 0, 1, 1], [], []>} : vector<8x3xbf16>, vector<3x384xbf16>, vector<8x384xf32> -> vector<8x384xf32>
    %57 = arith.addf %51, %56 : vector<8x384xf32>
    %c0_18 = arith.constant 0 : index
    %c0_19 = arith.constant 0 : index
    %58 = vector.load %arg4[%c0_18, %c0_19] : memref<8x1xf32, #tpu.memory_space<vmem>>, vector<8x1xf32>
    %59 = vector.broadcast %58 : vector<8x1xf32> to vector<8x384xf32>
    %60 = arith.addf %57, %59 : vector<8x384xf32>
    %c0_20 = arith.constant 0 : index
    %c0_21 = arith.constant 0 : index
    %c0_22 = arith.constant 0 : index
    %61 = vector.load %arg5[%c0_20, %c0_21, %c0_22] : memref<1x8x384xf32, #tpu.memory_space<vmem>>, vector<1x8x384xf32>
    %62 = vector.shape_cast %61 : vector<1x8x384xf32> to vector<8x384xf32>
    %63 = vector.shape_cast %60 : vector<8x384xf32> to vector<1x8x384xf32>
    tpu.vector_store %arg5[%c0_20, %c0_21, %c0_22], %63 {strides = array<i32>} : memref<1x8x384xf32, #tpu.memory_space<vmem>>, vector<1x8x384xf32>,
    return
  }
  func.func @transform_0(%arg0: i32, %arg1: i32) -> (i32, i32, i32) {
    %c0_i32 = arith.constant 0 : i32
    %c0_i32_0 = arith.constant 0 : i32
    %c0_i32_1 = arith.constant 0 : i32
    return %arg0, %c0_i32, %c0_i32_0 : i32, i32, i32
  }
  func.func @transform_1(%arg0: i32, %arg1: i32) -> (i32, i32, i32) {
    %c0_i32 = arith.constant 0 : i32
    %c0_i32_0 = arith.constant 0 : i32
    %c0_i32_1 = arith.constant 0 : i32
    return %c0_i32, %arg1, %c0_i32_0 : i32, i32, i32
  }
  func.func @transform_2(%arg0: i32, %arg1: i32) -> (i32, i32) {
    %c0_i32 = arith.constant 0 : i32
    %c0_i32_0 = arith.constant 0 : i32
    return %arg1, %c0_i32 : i32, i32
  }
  func.func @transform_3(%arg0: i32, %arg1: i32) -> (i32, i32, i32) {
    %c0_i32 = arith.constant 0 : i32
    %c0_i32_0 = arith.constant 0 : i32
    return %arg0, %arg1, %c0_i32 : i32, i32, i32
  }
}

</mosaic_0001>

<bundles_post_ra>
// kernel: tpu_custom_call.1
= control target key start
LH: loop header
LB: loop body
LE: loop exit
PB: predicated region body
PF: predicated region fallthrough
CT: control target
= control target key end

     0   :  { %8 = vsyncpa [#allocation3], 0  ;;  %s1989_s0 = inlined_call_operand.vmem [shape: bf16[4,3,384], index: 0, kind: input, shape index: {}]   ;;  %s1990_s1 = inlined_call_operand.vmem [shape: bf16[9,8,3], index: 1, kind: input, shape index: {}]   ;;  %s1991_s2 = inlined_call_operand.vmem [shape: f32[8,1], index: 2, kind: input, shape index: {}]   ;;  %s1992_s3 = inlined_call_operand.hbm [shape: f32[4,8,384], index: 3, kind: output, shape index: {}]  }
   0x1   :  { %10 = vsyncpa [#allocation3 + $0x1], 0  ;;  %s1664_s12 = smov 0   ;;  %s1666_s13 = smov 0  }
   0x2   :  { %s1668_s14 = smov 0   ;;  %s1670_s15 = smov 0  }
   0x3   :  { %s1672_s16 = smov 0   ;;  %s1674_s17 = smov 0  }
   0x4 LB: > { %s1344_s18 = sadd.s32 4294967295, %s1632_s17   ;;  %s1345_s19 = sadd.s32 4294967294, %s1632_s17   ;;  %s1632_s17 = sphi %s1674_s17, %s16_s17   ;;  %s1628_s16 = sphi %s1672_s16, %s1999_s16   ;;  %s1624_s15 = sphi %s1670_s15, %s1998_s15   ;;  %s1620_s14 = sphi %s1668_s14, %s1997_s14   ;;  %s1616_s13 = sphi %s1666_s13, %s1996_s13   ;;  %s1612_s12 = sphi %s1664_s12, %s1995_s12  }
   0x5   : > { %s28_s20 = sadd.s32 1, %s1628_s16  ;;  %s115_s21 = sadd.s32 1, %s1620_s14 }
   0x6   : > { %p30_p0 = scmp.ge.s32.totalorder %s28_s20, 4  ;;  %p125_p1 = scmp.ne.s32.totalorder %s1620_s14, %s1616_s13 }
   0x7   : > { %p126_p2 = scmp.eq.s32.totalorder %s1344_s18, 3  ;;  %p131_p3 = scmp.ne.s32.totalorder %s1616_s13, %s1612_s12 }
   0x8   : > { %s2001_s20 = smov (%p30_p0, %s28_s20), 0  ;;  %p132_p5 = scmp.eq.s32.totalorder %s1345_s19, 3 }
   0x9   : > { %p1704_p4 = por %p126_p2, %p125_p1  ;;  %s110_s23 = ssub.s32 %s1628_s16, %s2001_s20 }
   0xa   : > { %p1350_p6 = scmp.ge.s32.totalorder %s1632_s17, 1  ;;  %p113_p7 = scmp.eq.s32.totalorder %s110_s23, 0 }
   0xb   : > { %p1711_p8 = por %p132_p5, %p131_p3  ;;  %p172_p9 = scmp.lt.s32.totalorder %s1632_s17, 5 }
   0xc   : > { %s1717_s25 = scalar_select %p113_p7, %s1620_s14, %s115_s21  }
   0xd   : > { %p173_p10 = pnand %p1350_p6, %p172_p9 }
   0xe   : > { %p204_p11 = scmp.lt.s32.totalorder (!%p173_p10), %s1624_s15, 3  ;;  %s1634_s4 = smov (!%p173_p10), 92   ;;  %v1636_v5 = vmov (!%p173_p10), 0.0   ;;  %vm1638_vm0 = vmmov (!%p173_p10), 0   ;;  %v1639_v7 = vmov (!%p173_p10), 0   ;;  %v239_v8 = vlaneseq (!%p173_p10) }
   0xf   : > { %176 = sbr.rel (%p173_p10) target bundleno = 545 (0x221), region = 32  ;;  %s1635_s5 = smov (!%p173_p10), 110   ;;  %1391 = vmatprep.subr.bf16.mxu1 (!%p173_p10), %v1636_v5  ;;  %1393 = vmatprep.mubr.msk.bf16.mxu1 (!%p173_p10), %vm1638_vm0, %v1636_v5  ;;  %v1641_v9 = vmov (!%p173_p10), 1983009808   ;;  %vm252_vm2 = vcmask (!%p173_p10), 1040384   ;;  %vm253_vm5 = vcmask (!%p173_p10), 1041408  }
  0x10   : > { %s1637_s6 = smov (!%p173_p10), 127   ;;  %297 = vmatprep.mubr.bf16.mxu0 (!%p173_p10), %v1639_v7  ;;  %1552 = vset.pattern.permute.xlu0 (!%p173_p10), %v1639_v7  ;;  %s1640_s7 = smov (!%p173_p10), 126   ;;  %v349_v10 = vunpack.c.l.s4 (!%p173_p10), %v1641_v9  ;;  %v1737_v12 = vand.u32 (!%p173_p10), 127, %v239_v8  ;;  %v352_v14 = vshrl.u32 (!%p173_p10), %v239_v8, 7  ;;  %v1642_v31 = vmov (!%p173_p10), 65535  }
  0x11   : > { %v254_v32 = vsel (!%p173_p10), %vm252_vm2, 4294967295, %v1642_v31  ;;  %v222_v57 = vld [vmem:[%s1990_s1 + $0x4] sm:$0xf] (!%p173_p10)  ;;  %vm248_vm7 = vcmask (!%p173_p10), 23552   ;;  %s201_s11 = sand.u32 (!%p173_p10), 1, %s1616_s13   ;;  %s1447_s19 = smul.u32 (!%p173_p10), 384, %s1624_s15 }
  0x12   : > { %v350_v13 = vunpack.c.0.s8 (!%p173_p10), %v349_v10  ;;  %vm571_vm1 = vcmp.lt.s32.totalorder (!%p173_p10), %v1737_v12, 110  ;;  %vm896_vm3 = vcmp.lt.s32.totalorder (!%p173_p10), %v1737_v12, 92  ;;  %vm241_vm4 = vcmp.lt.s32.totalorder (!%p173_p10), %v1737_v12, 127  ;;  %s1445_s18 = smul.u32 (!%p173_p10), 24, %s201_s11 }
  0x13   : > { %vm462_vm6 = vcmp.lt.s32.totalorder (!%p173_p10), %v1737_v12, 126  ;;  %v1776_v47 = vsel (!%p173_p10), %vm253_vm5, %v254_v32, 0  ;;  %v228_v12 = vld [vmem:[%s1990_s1 + $0x1c] sm:$0xf] (!%p173_p10)  ;;  %s1940_s28 = scalar_lea.hbm (!%p173_p10), %s1992_s3, %s1447_s19 }
  0x14   : > { %v353_v19 = vsub.s32 (!%p173_p10), %v350_v13, %v352_v14  ;;  %s203_s21 = scalar_lea.vmem (!%p173_p10), [#allocation2], %s1445_s18 }
  0x15   : > { %s1244_s23 = sshll.u32 (!%p173_p10), %s203_s21, 4  ;;  %s1942_s23 = int_to_ptr.vmem [resolvable:$true] %s1244_s23 }
  0x16   : > { %s205_s26 = scalar_select %p204_p11, %s1624_s15, 3 }
  0x17   : > { %s1228_s15 = scalar_lea.sflag [#allocation3], %s201_s11  ;;  %s1554_s29 = scalar_lea.vmem %s1942_s23, 384 }
  0x18   : > { %s1446_s27 = smul.u32 6, %s205_s26  ;;  %p1555_p12 = scmp.ne.s32.totalorder %s1942_s23, %s1554_s29 }
  0x1a   : > { %s208_s30 = scalar_lea.vmem %s1989_s0, %s1446_s27  ;;  %p1556_p13 = pnand %p1555_p12, %p1704_p4 }
  0x1b   : > { %v1724_v0 = vld [vmem:[%s208_s30] sm:$0x3f]  ;;  %s1643_s30 = smov [#allocation2]  }
  0x1c   : > { %v219_v1 = vunpack.c.l.bf16 %v1724_v0  ;;  %v220_v2 = vunpack.c.h.bf16 %v1724_v0  ;;  %v354_v27 = vrot.slane %v1724_v0, %v353_v19  ;;  %v347_v28 = vcombine.high %v1724_v0, %v1724_v0  ;;  %p1557_p0 = pneg %p1556_p13 }
  0x1e   : > { %v231_v3 = vcombine.high %v219_v1, %v219_v1  ;;  %894 = vrot.lane.b32.xlu1 %v220_v2, %s1634_s4  ;;  %v362_v38 = vcombine.high %v354_v27, %v354_v27  ;;  %v361_v42 = vrot.slane %v347_v28, %v353_v19  ;;  %v367_v61 = vand.u32 %v354_v27, %v1776_v47 }
  0x20   : > { %v1512_v4 = vpack.i.bf16 %v231_v3, %v219_v1  ;;  %v1522_v6 = vpack.i.bf16 %v220_v2, %v231_v3  ;;  %v370_v54 = vand.u32 %v362_v38, %v1776_v47  ;;  %v373_v58 = vand.u32 %v361_v42, %v1776_v47 }
  0x22   : > { %1513 = vrot.lane.b32.xlu0 %v1512_v4, %s1635_s5  ;;  %1518 = vrot.lane.b32.xlu1 %v1512_v4, %s1634_s4  ;;  %v221_v4 = vld [vmem:[%s1990_s1] sm:$0xf]  ;;  %s1558_s4 = sshll.u32 %s1643_s30, 4  ;;  %s1559_s4 = int_to_ptr.vmem [resolvable:$false] %s1558_s4 }
  0x23   : > { %p1561_p1 = scmp.lt.s32.totalorder %s1942_s23, %s1559_s4 }
  0x26   : > { %569 = vrot.lane.b32.xlu0 %v220_v2, %s1635_s5  ;;  %233 = vrot.lane.b32.xlu1 %v219_v1, %s1637_s6  ;;  %s1560_s5 = scalar_lea.vmem %s1559_s4, 768 }
  0x27   : > { %p1562_p2 = scmp.lt.s32.totalorder %s1560_s5, %s1554_s29 }
  0x29   : > { %p1563_p3 = por %p1562_p2, %p1561_p1 }
  0x2a   : > { %1523 = vrot.lane.b32.xlu0 %v1522_v6, %s1637_s6  ;;  %456 = vrot.lane.b32.xlu1 %v219_v1, %s1640_s7 }
  0x2b   : > { %p1564_p5 = pnand %p1563_p3, %p1557_p0 }
  0x2e   : > { %1528 = vrot.lane.b32.xlu0 %v1522_v6, %s1640_s7 }
  0x90   : > { %v895_v11 = vpop.permute.xlu1 %894 }
  0x94   : > { %v1514_v15 = vpop.permute.xlu0 %1513  ;;  %v1519_v18 = vpop.permute.xlu1 %1518 }
  0x95   : > { %v1516_v16 = vunpack.i.h.bf16 %v1514_v15  ;;  %v1515_v17 = vunpack.i.l.bf16 %v1514_v15  ;;  %v1521_v24 = vunpack.i.h.bf16 %v1519_v18  ;;  %v1520_v25 = vunpack.i.l.bf16 %v1519_v18  ;;  %v1215_v15 = vld [vmem:[%s1991_s2] sm:$0xff] }
  0x97   : > { %v1740_v20 = vsel %vm571_vm1, %v1515_v17, %v1516_v16  ;;  %v1759_v35 = vsel %vm896_vm3, %v1520_v25, %v1521_v24  ;;  %v1761_v36 = vsel %vm896_vm3, %v1521_v24, %v895_v11  ;;  %v1763_v37 = vsel %vm896_vm3, %v895_v11, %v1520_v25  ;;  %v223_v11 = vld [vmem:[%s1990_s1 + $0x8] sm:$0xf] }
  0x98   : > { %v570_v21 = vpop.permute.xlu0 %569  ;;  %674 = vrot.lane.b32.xlu1 %v1740_v20, %s1637_s6  ;;  %v234_v30 = vpop.permute.xlu1 %233  ;;  %v1542_v50 = vpack.i.bf16 %v1763_v37, %v1761_v36  ;;  %v575_v10 = vpack.c.bf16 %v1740_v20, %v1740_v20 }
  0x99   : > { %v1744_v22 = vsel %vm571_vm1, %v1516_v16, %v570_v21  ;;  %v1746_v23 = vsel %vm571_vm1, %v570_v21, %v1515_v17  ;;  %v224_v16 = vld [vmem:[%s1990_s1 + $0xc] sm:$0xf] }
  0x9a   : > { %v1532_v26 = vpack.i.bf16 %v1746_v23, %v1744_v22  ;;  %v576_v2 = vpack.c.bf16 %v1744_v22, %v1744_v22  ;;  %v577_v9 = vpack.c.bf16 %v1746_v23, %v1746_v23  ;;  %v582_v14 = vand.u32 %v575_v10, %v1776_v47 }
  0x9c   : > { %v1524_v29 = vpop.permute.xlu0 %1523  ;;  %1533 = vrot.lane.b32.xlu0 %v1532_v26, %s1637_s6  ;;  %782 = vrot.lane.b32.xlu1 %v1740_v20, %s1640_s7  ;;  %v457_v55 = vpop.permute.xlu1 %456  ;;  %v585_v8 = vand.u32 %v576_v2, %v1776_v47  ;;  %v588_v13 = vand.u32 %v577_v9, %v1776_v47 }
  0x9d   : > { %v1526_v33 = vunpack.i.h.bf16 %v1524_v29  ;;  %v1525_v34 = vunpack.i.l.bf16 %v1524_v29 }
  0x9f   : > { %v243_v39 = vsel %vm241_vm4, %v234_v30, %v1525_v34  ;;  %v244_v40 = vsel %vm241_vm4, %v1526_v33, %v234_v30  ;;  %v242_v41 = vsel %vm241_vm4, %v1525_v34, %v1526_v33 }
  0xa0   : > { %v245_v43 = vpack.c.bf16 %v243_v39, %v243_v39  ;;  %v247_v44 = vpack.c.bf16 %v244_v40, %v244_v40  ;;  %1538 = vrot.lane.b32.xlu0 %v1532_v26, %s1640_s7  ;;  %v246_v45 = vpack.c.bf16 %v242_v41, %v242_v41  ;;  %v1529_v46 = vpop.permute.xlu0 %1528  ;;  %999 = vrot.lane.b32.xlu1 %v1759_v35, %s1637_s6 }
  0xa1   : > { %v1531_v48 = vunpack.i.h.bf16 %v1529_v46  ;;  %v1530_v49 = vunpack.i.l.bf16 %v1529_v46  ;;  %v901_v40 = vpack.c.bf16 %v1761_v36, %v1761_v36 }
  0xa2   : > { %v260_v51 = vand.u32 %v1776_v47, %v246_v45  ;;  %v263_v52 = vand.u32 %v1776_v47, %v247_v44  ;;  %v257_v53 = vand.u32 %v1776_v47, %v245_v43  ;;  %v225_v43 = vld [vmem:[%s1990_s1 + $0x10] sm:$0xf] }
  0xa3   : > { %v463_v56 = vsel %vm462_vm6, %v1530_v49, %v1531_v48  ;;  %v465_v60 = vsel %vm462_vm6, %v1531_v48, %v457_v55  ;;  %v464_v62 = vsel %vm462_vm6, %v457_v55, %v1530_v49 }
  0xa4   : > { %265 = vmatprep.subr.bf16.mxu0 %v260_v51  ;;  %1392 = vmatpush3.bf16.msra.mxu1 %v263_v52  ;;  %v467_v59 = vpack.c.bf16 %v463_v56, %v463_v56  ;;  %v468_v0 = vpack.c.bf16 %v465_v60, %v465_v60  ;;  %v466_v1 = vpack.c.bf16 %v464_v62, %v464_v62 }
  0xa5   : > { %266 = vmatpush1.bf16.msra.mxu0 %v257_v53  ;;  %1543 = vrot.lane.b32.xlu0 %v1542_v50, %s1637_s6  ;;  %v910_v51 = vand.u32 %v901_v40, %v1776_v47  ;;  %v902_v53 = vpack.c.bf16 %v1763_v37, %v1763_v37  ;;  %v900_v56 = vpack.c.bf16 %v1759_v35, %v1759_v35 }
  0xa6   : > { %375 = vmatprep.subr.bf16.mxu0 %v370_v54  ;;  %1397 = vmatprep.subr.bf16.mxu1 %v1636_v5  ;;  %v476_v63 = vand.u32 %v467_v59, %v1776_v47  ;;  %v479_v3 = vand.u32 %v468_v0, %v1776_v47  ;;  %v473_v6 = vand.u32 %v466_v1, %v1776_v47 }
  0xa7   : > { %1394 = vmatmul.mubr.msk.bf16.vlgmr.msra.gmra.mrb[0].mxu1 %vm248_vm7, %v222_v57  ;;  %1107 = vrot.lane.b32.xlu1 %v1759_v35, %s1640_s7  ;;  %v907_v35 = vand.u32 %v900_v56, %v1776_v47 }
  0xa8   : > { %1352 = vmatmul.mubr.msk.bf16.vlgmr.msra.gmra.mrb[0].mxu0 %vm248_vm7, %v222_v57  ;;  %1398 = vmatpush3.bf16.msra.mxu1 %v373_v58  ;;  %v226_v58 = vld [vmem:[%s1990_s1 + $0x14] sm:$0xf] }
  0xa9   : > { %376 = vmatpush1.bf16.msra.mxu0 %v367_v61  ;;  %1399 = vmatprep.mubr.msk.bf16.mxu1 %vm1638_vm0, %v1636_v5  ;;  %v913_v61 = vand.u32 %v902_v53, %v1776_v47 }
  0xaa   : > { %1548 = vrot.lane.b32.xlu0 %v1542_v50, %s1640_s7  ;;  %407 = vmatprep.mubr.bf16.mxu0 %v1639_v7 }
  0xab   : > { %481 = vmatprep.subr.bf16.mxu0 %v476_v63  ;;  %1403 = vmatprep.subr.bf16.mxu1 %v1636_v5 }
  0xae   : > { %1218 = vperm.xlu0 %1552, %v1215_v15  }
  0xaf   : > { %1400 = vmatmul.mubr.msk.bf16.vlgmr.msra.gmra.mrb[4].mxu1 %vm248_vm7, %v221_v4 }
  0xb0   : > { %1354 = vmatmul.mubr.msk.bf16.vlgmr.msra.gmra.mrb[4].mxu0 %vm248_vm7, %v221_v4  ;;  %1404 = vmatpush3.bf16.msra.mxu1 %v479_v3 }
  0xb1   : > { %482 = vmatpush1.bf16.msra.mxu0 %v473_v6  ;;  %1405 = vmatprep.mubr.msk.bf16.mxu1 %vm1638_vm0, %v1636_v5  ;;  %v227_v6 = vld [vmem:[%s1990_s1 + $0x18] sm:$0xf] }
  0xb2   : > { %590 = vmatprep.subr.bf16.mxu0 %v585_v8  ;;  %1409 = vmatprep.subr.bf16.mxu1 %v1636_v5 }
  0xb3   : > { %513 = vmatprep.mubr.bf16.mxu0 %v1639_v7 }
  0xb7   : > { %1406 = vmatmul.mubr.msk.bf16.vlgmr.msra.gmra.mrb[8].mxu1 %vm248_vm7, %v223_v11 }
  0xb8   : > { %1410 = vmatpush3.bf16.msra.mxu1 %v588_v13  ;;  %1356 = vmatmul.mubr.msk.bf16.vlgmr.msra.gmra.mrb[8].mxu0 %vm248_vm7, %v223_v11 }
  0xb9   : > { %591 = vmatpush1.bf16.msra.mxu0 %v582_v14  ;;  %622 = vmatprep.mubr.bf16.mxu0 %v1639_v7 }
  0xba   : > { %1411 = vmatprep.mubr.msk.bf16.mxu1 %vm1638_vm0, %v1636_v5  ;;  %1415 = vmatprep.subr.bf16.mxu1 %v1636_v5 }
  0xbf   : > { %1412 = vmatmul.mubr.msk.bf16.vlgmr.msra.gmra.mrb[12].mxu1 %vm248_vm7, %v224_v16 }
  0xc0   : > { %1358 = vmatmul.mubr.msk.bf16.vlgmr.msra.gmra.mrb[12].mxu0 %vm248_vm7, %v224_v16  ;;  %1417 = vmatprep.mubr.msk.bf16.mxu1 %vm1638_vm0, %v1636_v5 }
  0xc1   : > { %730 = vmatprep.mubr.bf16.mxu0 %v1639_v7 }
 0x10a   : > { %v675_v17 = vpop.permute.xlu1 %674 }
 0x10e   : > { %v1534_v18 = vpop.permute.xlu0 %1533  ;;  %v783_v30 = vpop.permute.xlu1 %782 }
 0x10f   : > { %v1536_v19 = vunpack.i.h.bf16 %v1534_v18  ;;  %v1535_v20 = vunpack.i.l.bf16 %v1534_v18  ;;  %v229_v18 = vld [vmem:[%s1990_s1 + $0x20] sm:$0xf] }
 0x111   : > { %v681_v21 = vsel %vm241_vm4, %v675_v17, %v1535_v20  ;;  %v682_v22 = vsel %vm241_vm4, %v1536_v19, %v675_v17  ;;  %v680_v23 = vsel %vm241_vm4, %v1535_v20, %v1536_v19 }
 0x112   : > { %v683_v24 = vpack.c.bf16 %v681_v21, %v681_v21  ;;  %v685_v25 = vpack.c.bf16 %v682_v22, %v682_v22  ;;  %v1539_v26 = vpop.permute.xlu0 %1538  ;;  %v684_v27 = vpack.c.bf16 %v680_v23, %v680_v23  ;;  %v1000_v57 = vpop.permute.xlu1 %999 }
 0x113   : > { %v1541_v28 = vunpack.i.h.bf16 %v1539_v26  ;;  %v1540_v29 = vunpack.i.l.bf16 %v1539_v26 }
 0x114   : > { %v693_v31 = vand.u32 %v684_v27, %v1776_v47  ;;  %v696_v32 = vand.u32 %v685_v25, %v1776_v47  ;;  %v690_v33 = vand.u32 %v683_v24, %v1776_v47 }
 0x115   : > { %v789_v34 = vsel %vm462_vm6, %v783_v30, %v1540_v29  ;;  %v790_v38 = vsel %vm462_vm6, %v1541_v28, %v783_v30  ;;  %v788_v39 = vsel %vm462_vm6, %v1540_v29, %v1541_v28 }
 0x116   : > { %v791_v41 = vpack.c.bf16 %v789_v34, %v789_v34  ;;  %v793_v42 = vpack.c.bf16 %v790_v38, %v790_v38  ;;  %698 = vmatprep.subr.bf16.mxu0 %v693_v31  ;;  %1416 = vmatpush3.bf16.msra.mxu1 %v696_v32  ;;  %v792_v44 = vpack.c.bf16 %v788_v39, %v788_v39 }
 0x117   : > { %699 = vmatpush1.bf16.msra.mxu0 %v690_v33  ;;  %1421 = vmatprep.subr.bf16.mxu1 %v1636_v5  ;;  %v1544_v45 = vpop.permute.xlu0 %1543 }
 0x118   : > { %v801_v46 = vand.u32 %v792_v44, %v1776_v47  ;;  %v804_v48 = vand.u32 %v793_v42, %v1776_v47  ;;  %v798_v49 = vand.u32 %v791_v41, %v1776_v47  ;;  %v1546_v36 = vunpack.i.h.bf16 %v1544_v45 }
 0x119   : > { %1418 = vmatmul.mubr.msk.bf16.vlgmr.msra.gmra.mrb[16].mxu1 %vm248_vm7, %v225_v43  ;;  %v1545_v50 = vunpack.i.l.bf16 %v1544_v45  ;;  %v1108_v4 = vpop.permute.xlu1 %1107 }
 0x11a   : > { %1360 = vmatmul.mubr.msk.bf16.vlgmr.msra.gmra.mrb[16].mxu0 %vm248_vm7, %v225_v43  ;;  %806 = vmatprep.subr.bf16.mxu0 %v801_v46  ;;  %v1007_v37 = vsel %vm241_vm4, %v1546_v36, %v1000_v57 }
 0x11b   : > { %1422 = vmatpush3.bf16.msra.mxu1 %v804_v48  ;;  %807 = vmatpush1.bf16.msra.mxu0 %v798_v49  ;;  %v1005_v52 = vsel %vm241_vm4, %v1545_v50, %v1546_v36  ;;  %v1006_v63 = vsel %vm241_vm4, %v1000_v57, %v1545_v50  ;;  %v1010_v0 = vpack.c.bf16 %v1007_v37, %v1007_v37 }
 0x11c   : > { %915 = vmatprep.subr.bf16.mxu0 %v910_v51  ;;  %v1549_v54 = vpop.permute.xlu0 %1548  ;;  %1423 = vmatprep.mubr.msk.bf16.mxu1 %vm1638_vm0, %v1636_v5  ;;  %v1009_v55 = vpack.c.bf16 %v1005_v52, %v1005_v52  ;;  %v1008_v2 = vpack.c.bf16 %v1006_v63, %v1006_v63 }
 0x11d   : > { %1427 = vmatprep.subr.bf16.mxu1 %v1636_v5  ;;  %838 = vmatprep.mubr.bf16.mxu0 %v1639_v7  ;;  %v1551_v59 = vunpack.i.h.bf16 %v1549_v54  ;;  %v1550_v60 = vunpack.i.l.bf16 %v1549_v54  ;;  %v1021_v3 = vand.u32 %v1010_v0, %v1776_v47 }
 0x11e   : > { %v1018_v62 = vand.u32 %v1009_v55, %v1776_v47  ;;  %v1015_v9 = vand.u32 %v1008_v2, %v1776_v47 }
 0x11f   : > { %v1113_v1 = vsel %vm462_vm6, %v1550_v60, %v1551_v59  ;;  %v1115_v10 = vsel %vm462_vm6, %v1551_v59, %v1108_v4  ;;  %v1114_v11 = vsel %vm462_vm6, %v1108_v4, %v1550_v60 }
 0x120   : > { %v1117_v8 = vpack.c.bf16 %v1113_v1, %v1113_v1  ;;  %v1118_v14 = vpack.c.bf16 %v1115_v10, %v1115_v10  ;;  %v1116_v15 = vpack.c.bf16 %v1114_v11, %v1114_v11 }
 0x121   : > { %1424 = vmatmul.mubr.msk.bf16.vlgmr.msra.gmra.mrb[20].mxu1 %vm248_vm7, %v226_v58 }
 0x122   : > { %1428 = vmatpush3.bf16.msra.mxu1 %v913_v61  ;;  %1362 = vmatmul.mubr.msk.bf16.vlgmr.msra.gmra.mrb[20].mxu0 %vm248_vm7, %v226_v58  ;;  %v1126_v13 = vand.u32 %v1117_v8, %v1776_v47  ;;  %v1129_v16 = vand.u32 %v1118_v14, %v1776_v47  ;;  %v1123_v17 = vand.u32 %v1116_v15, %v1776_v47 }
 0x123   : > { %916 = vmatpush1.bf16.msra.mxu0 %v907_v35  ;;  %1429 = vmatprep.mubr.msk.bf16.mxu1 %vm1638_vm0, %v1636_v5 }
 0x124   : > { %1023 = vmatprep.subr.bf16.mxu0 %v1018_v62  ;;  %1433 = vmatprep.subr.bf16.mxu1 %v1636_v5 }
 0x125   : > { %947 = vmatprep.mubr.bf16.mxu0 %v1639_v7 }
 0x129   : > { %1430 = vmatmul.mubr.msk.bf16.vlgmr.msra.gmra.mrb[24].mxu1 %vm248_vm7, %v227_v6 }
 0x12a   : > { %1434 = vmatpush3.bf16.msra.mxu1 %v1021_v3  ;;  %1364 = vmatmul.mubr.msk.bf16.vlgmr.msra.gmra.mrb[24].mxu0 %vm248_vm7, %v227_v6 }
 0x12b   : > { %1024 = vmatpush1.bf16.msra.mxu0 %v1015_v9  ;;  %1435 = vmatprep.mubr.msk.bf16.mxu1 %vm1638_vm0, %v1636_v5 }
 0x12c   : > { %1131 = vmatprep.subr.bf16.mxu0 %v1126_v13  ;;  %1439 = vmatprep.subr.bf16.mxu1 %v1636_v5 }
 0x12d   : > { %1055 = vmatprep.mubr.bf16.mxu0 %v1639_v7 }
 0x131   : > { %1436 = vmatmul.mubr.msk.bf16.vlgmr.msra.gmra.mrb[28].mxu1 %vm248_vm7, %v228_v12 }
 0x132   : > { %1440 = vmatpush3.bf16.msra.mxu1 %v1129_v16  ;;  %1366 = vmatmul.mubr.msk.bf16.vlgmr.msra.gmra.mrb[28].mxu0 %vm248_vm7, %v228_v12 }
 0x133   : > { %1132 = vmatpush1.bf16.msra.mxu0 %v1123_v17  ;;  %1441 = vmatprep.mubr.msk.bf16.mxu1 %vm1638_vm0, %v1636_v5 }
 0x134   : > { %1163 = vmatprep.mubr.bf16.mxu0 %v1639_v7 }
 0x139   : > { %1442 = vmatmul.mubr.msk.bf16.vlgmr.msra.gmra.mrb[32].mxu1 %vm248_vm7, %v229_v18 }
 0x13a   : > { %1368 = vmatmul.mubr.msk.bf16.vlgmr.msra.gmra.mrb[32].mxu0 %vm248_vm7, %v229_v18 }
 0x17a   : > { %v340_v47 = vpop.f32.mrb[0].mxu1 }
 0x17b   : > { %v299_v19 = vpop.f32.mrb[0].mxu0  ;;  %v1395_v20 = vpop.f32.mrb[1].mxu1 }
 0x17c   : > { %v301_v21 = vpop.f32.mrb[1].mxu0  ;;  %v343_v22 = vpop.f32.mrb[2].mxu1 }
 0x17d   : > { %v303_v23 = vpop.f32.mrb[2].mxu0  ;;  %v1396_v24 = vpop.f32.mrb[3].mxu1 }
 0x17e   : > { %v304_v25 = vpop.f32.mrb[3].mxu0 }
 0x182   : > { %v450_v26 = vpop.f32.mrb[4].mxu1 }
 0x183   : > { %v409_v5 = vpop.f32.mrb[4].mxu0  ;;  %v451_v27 = vadd.f32 %v450_v26, %v340_v47  ;;  %v1401_v7 = vpop.f32.mrb[5].mxu1 }
 0x184   : > { %v410_v28 = vadd.f32 %v409_v5, %v299_v19  ;;  %v411_v29 = vpop.f32.mrb[5].mxu0  ;;  %v453_v30 = vpop.f32.mrb[6].mxu1 }
 0x185   : > { %v412_v31 = vadd.f32 %v411_v29, %v301_v21  ;;  %v413_v32 = vpop.f32.mrb[6].mxu0  ;;  %v1402_v33 = vpop.f32.mrb[7].mxu1 }
 0x186   : > { %v414_v34 = vpop.f32.mrb[7].mxu0 }
 0x18a   : > { %v556_v38 = vpop.f32.mrb[8].mxu1 }
 0x18b   : > { %v515_v39 = vpop.f32.mrb[8].mxu0  ;;  %v564_v40 = vadd.f32 %v556_v38, %v451_v27  ;;  %v1407_v41 = vpop.f32.mrb[9].mxu1 }
 0x18c   : > { %v562_v42 = vadd.f32 %v515_v39, %v410_v28  ;;  %v517_v43 = vpop.f32.mrb[9].mxu0  ;;  %v559_v44 = vpop.f32.mrb[10].mxu1 }
 0x18d   : > { %v563_v45 = vadd.f32 %v517_v43, %v412_v31  ;;  %v519_v46 = vpop.f32.mrb[10].mxu0  ;;  %v1408_v48 = vpop.f32.mrb[11].mxu1 }
 0x18e   : > { %v520_v49 = vpop.f32.mrb[11].mxu0  ;;  %v1219_v41 = vpop.permute.xlu0 %1218 }
 0x192   : > { %v665_v36 = vpop.f32.mrb[12].mxu1 }
 0x193   : > { %v624_v50 = vpop.f32.mrb[12].mxu0  ;;  %v673_v51 = vadd.f32 %v665_v36, %v564_v40  ;;  %v1413_v52 = vpop.f32.mrb[13].mxu1 }
 0x194   : > { %v671_v53 = vadd.f32 %v624_v50, %v562_v42  ;;  %v626_v54 = vpop.f32.mrb[13].mxu0  ;;  %v668_v55 = vpop.f32.mrb[14].mxu1 }
 0x195   : > { %v672_v56 = vadd.f32 %v626_v54, %v563_v45  ;;  %v628_v57 = vpop.f32.mrb[14].mxu0  ;;  %v1414_v58 = vpop.f32.mrb[15].mxu1 }
 0x196   : > { %v629_v37 = vpop.f32.mrb[15].mxu0 }
 0x1ec   : > { %v773_v59 = vpop.f32.mrb[16].mxu1 }
 0x1ed   : > { %v781_v60 = vadd.f32 %v773_v59, %v673_v51  ;;  %v732_v61 = vpop.f32.mrb[16].mxu0  ;;  %v1419_v62 = vpop.f32.mrb[17].mxu1 }
 0x1ee   : > { %v779_v35 = vadd.f32 %v732_v61, %v671_v53  ;;  %v734_v63 = vpop.f32.mrb[17].mxu0  ;;  %v776_v0 = vpop.f32.mrb[18].mxu1 }
 0x1ef   : > { %v780_v1 = vadd.f32 %v734_v63, %v672_v56  ;;  %v736_v2 = vpop.f32.mrb[18].mxu0  ;;  %v1420_v3 = vpop.f32.mrb[19].mxu1 }
 0x1f0   : > { %v737_v4 = vpop.f32.mrb[19].mxu0 }
 0x1f4   : > { %v881_v6 = vpop.f32.mrb[20].mxu1 }
 0x1f5   : > { %v889_v8 = vadd.f32 %v881_v6, %v781_v60  ;;  %v840_v9 = vpop.f32.mrb[20].mxu0  ;;  %v1425_v10 = vpop.f32.mrb[21].mxu1 }
 0x1f6   : > { %v887_v11 = vadd.f32 %v840_v9, %v779_v35  ;;  %v842_v13 = vpop.f32.mrb[21].mxu0  ;;  %v884_v14 = vpop.f32.mrb[22].mxu1 }
 0x1f7   : > { %v888_v15 = vadd.f32 %v842_v13, %v780_v1  ;;  %v844_v12 = vpop.f32.mrb[22].mxu0  ;;  %v1426_v16 = vpop.f32.mrb[23].mxu1 }
 0x1f8   : > { %v845_v17 = vpop.f32.mrb[23].mxu0 }
 0x1fc   : > { %v990_v18 = vpop.f32.mrb[24].mxu1 }
 0x1fd   : > { %v998_v47 = vadd.f32 %v990_v18, %v889_v8  ;;  %v949_v19 = vpop.f32.mrb[24].mxu0  ;;  %v1431_v20 = vpop.f32.mrb[25].mxu1 }
 0x1fe   : > { %v996_v21 = vadd.f32 %v949_v19, %v887_v11  ;;  %v951_v22 = vpop.f32.mrb[25].mxu0  ;;  %v993_v23 = vpop.f32.mrb[26].mxu1 }
 0x1ff   : > { %v997_v24 = vadd.f32 %v951_v22, %v888_v15  ;;  %v953_v25 = vpop.f32.mrb[26].mxu0  ;;  %v1432_v26 = vpop.f32.mrb[27].mxu1 }
 0x200   : > { %v954_v5 = vpop.f32.mrb[27].mxu0 }
 0x204   : > { %v1098_v27 = vpop.f32.mrb[28].mxu1 }
 0x205   : > { %v1106_v7 = vadd.f32 %v1098_v27, %v998_v47  ;;  %v1057_v28 = vpop.f32.mrb[28].mxu0  ;;  %v1437_v29 = vpop.f32.mrb[29].mxu1 }
 0x206   : > { %v1104_v30 = vadd.f32 %v1057_v28, %v996_v21  ;;  %v1059_v31 = vpop.f32.mrb[29].mxu0  ;;  %v1101_v32 = vpop.f32.mrb[30].mxu1 }
 0x207   : > { %v1105_v33 = vadd.f32 %v1059_v31, %v997_v24  ;;  %v1061_v34 = vpop.f32.mrb[30].mxu0  ;;  %v1438_v38 = vpop.f32.mrb[31].mxu1 }
 0x208   : > { %v1062_v39 = vpop.f32.mrb[31].mxu0 }
 0x20c   : > { %v1206_v40 = vpop.f32.mrb[32].mxu1 }
 0x20d   : > { %v1214_v42 = vadd.f32 %v1206_v40, %v1106_v7  ;;  %v1165_v43 = vpop.f32.mrb[32].mxu0  ;;  %v1443_v44 = vpop.f32.mrb[33].mxu1 }
 0x20e   : > { %v1212_v45 = vadd.f32 %v1165_v43, %v1104_v30  ;;  %v1167_v46 = vpop.f32.mrb[33].mxu0  ;;  %v1209_v48 = vpop.f32.mrb[34].mxu1 }
 0x20f   : > { %v1223_v49 = vadd.f32 %v1219_v41, %v1214_v42  ;;  %v1213_v36 = vadd.f32 %v1167_v46, %v1105_v33  ;;  %v1169_v50 = vpop.f32.mrb[34].mxu0  ;;  %v1444_v51 = vpop.f32.mrb[35].mxu1 }
 0x210   : > { %v1221_v52 = vadd.f32 %v1219_v41, %v1212_v45  ;;  %v1170_v53 = vpop.f32.mrb[35].mxu0 }
 0x211   : > { %1226 = vst [vmem:[%s203_s21 + $0x10] sm:$0xff] %v1223_v49  ;;  %v1222_v54 = vadd.f32 %v1219_v41, %v1213_v36 }
 0x212   : > { %1224 = vst [vmem:[%s203_s21] sm:$0xff] %v1221_v52 }
 0x213   : > { %1225 = vst [vmem:[%s203_s21 + $0x8] sm:$0xff] %v1222_v54 }
 0x214   : > { %1567 = shalt.err (!%p1564_p5)
}
 0x215   : > { %s1568_s6 = scalar_lea.hbm %s1940_s28, 384  ;;  %s1572_s9 = scalar_lea.hbm %s1992_s3, 1536 }
 0x216   : > { %p1569_p6 = scmp.ne.s32.totalorder %s1940_s28, %s1568_s6  ;;  %p1573_p10 = scmp.lt.u32.totalorder %s1940_s28, %s1992_s3 }
 0x217   : > { %p1574_p11 = scmp.lt.u32.totalorder %s1572_s9, %s1568_s6  ;;  %p1576_p13 = scmp.lt.u32.totalorder %s1568_s6, %s1940_s28 }
 0x218   : > { %p1570_p7 = pnand %p1569_p6, %p1704_p4 }
 0x219   : > { %p1575_p12 = por %p1574_p11, %p1573_p10 }
 0x21a   : > { %p1571_p9 = pneg %p1570_p7 }
 0x21b   : > { %p1577_p0 = por %p1576_p13, %p1575_p12 }
 0x21d   : > { %p1578_p1 = pnand %p1577_p0, %p1571_p9 }
 0x21f   : > { %1581 = shalt.err (!%p1578_p1)
}
 0x220   : > { %1448 = dma.vmem_to_hbm [thread:$0]  (%p1704_p4), %s1942_s23, 384, %s1940_s28, %s1228_s15  }
 0x221 PF: > { %p1454_p2 = scmp.ge.s32.totalorder %s1632_s17, 2  ;;  %s1256_s18 = sand.u32 1, %s1612_s12  }
 0x222   : > { %s1257_s19 = scalar_lea.sflag [#allocation3], %s1256_s18 }
 0x223   : > { %p1451_p3 = pnand %p1454_p2, %p1711_p8 }
 0x225   : > { %1607 = dma.done.wait (!%p1451_p3), %s1257_s19, 384  }
 0x226   : > { %1609 = vsyncadd (!%p1451_p3), %s1257_s19, 4294966912  ;;  %s16_s17 = sadd.s32 1, %s1632_s17   ;;  %s1995_s12 = smov %s1616_s13 }
 0x227   : > { %p13_p5 = scmp.ge.s32.totalorder %s16_s17, 6   ;;  %s1996_s13 = smov %s1620_s14 }
 0x228   : > { %s1997_s14 = smov %s1717_s25  ;;  %s1998_s15 = smov %s1628_s16 }
 0x229   : > { %s1999_s16 = smov %s2001_s20  ;;  %15 = sbr.rel (!%p13_p5) target bundleno = 4 (0x4), region = 73 }
 0x230   :  { %1262 = vsyncpa [#allocation3], 1 }
 0x231   :  { %1264 = vsyncpa [#allocation3 + $0x1], 1 }

</bundles_post_ra>
